<compile_context>
chip_gen: v5e
topology: v5e:2x2
jax: 0.10.0
libtpu: 0.0.40
codegen_flags: <defaults>
</compile_context>

<pallas_src>
import jax
import jax.numpy as jnp
from jax.experimental import pallas as pl
from jax.experimental.pallas import tpu as pltpu


def _round_up(x, m):
    return ((x + m - 1) // m) * m


_M_TILE_MAX = 256   # batch-tile upper bound (MXU-friendly, VMEM-safe on v7x)
_N_TILE_MAX = 256   # output-tile upper bound (lane-dense, multiple of 128)
_K_TILE_MAX = 512   # max K block per input; larger feature dims get K-tiled


def _pick_tile(size, max_tile, align):
    """Largest power-of-two-ish tile <= max_tile dividing `size` (size % align == 0)."""
    t = max_tile
    while t > align:
        if size % t == 0:
            return t
        t //= 2
    return align


def _make_block_kernel(n_inputs, segments, total_k):
    """Build the fused concat+linear kernel.

    Kernel refs: x_0..x_{n-1}, w_0..w_{n-1}, bias, out, acc_scratch.
    segments[i] = (start_tile, num_tiles) of input i along the grid K axis.
    """

    def kernel(*refs):
        x_refs = refs[:n_inputs]
        w_refs = refs[n_inputs:2 * n_inputs]
        b_ref = refs[2 * n_inputs]
        o_ref = refs[2 * n_inputs + 1]
        acc_ref = refs[2 * n_inputs + 2]
        k = pl.program_id(2)

        @pl.when(k == 0)
        def _init():
            acc_ref[...] = jnp.zeros_like(acc_ref)

        for i in range(n_inputs):
            start, ntiles = segments[i]

            def _contrib(i=i):
                acc_ref[...] += jnp.dot(
                    x_refs[i][...], w_refs[i][...],
                    preferred_element_type=jnp.float32)

            if n_inputs == 1:
                _contrib()
            else:
                pl.when((k >= start) & (k < start + ntiles))(_contrib)

        @pl.when(k == total_k - 1)
        def _finalize():
            # Bias added once, in the epilogue only.
            o_ref[...] = (acc_ref[...] + b_ref[...]).astype(o_ref.dtype)

    return kernel


def block_eval_pallas(xs, ws, b_padded, outsize, out_dtype=jnp.float32):
    """Fused `concat(xs, -1) @ W + b` without materializing the concat.

    xs       : list of [B, d_i] activations (cast to bf16 here).
    ws       : list of [d_i, N_pad] bf16 row-slices of W (columns pre-padded).
    b_padded : [1, N_pad] float32 bias.
    """
    n = len(xs)
    B = xs[0].shape[0]
    n_pad = b_padded.shape[1]

    # --- M (batch) tiling: pad to a multiple of 8, pick the largest tile. ---
    m_pad = _round_up(B, 8)
    tm = _pick_tile(m_pad, _M_TILE_MAX, 8)

    # --- N (output) tiling: n_pad is already a multiple of 128. ---
    tn = _pick_tile(n_pad, _N_TILE_MAX, 128)

    # --- K: each input owns a contiguous segment of the grid K axis. ---
    xs_p, ws_p, specs_x, specs_w, segments = [], [], [], [], []
    k_start = 0
    for x, w in zip(xs, ws):
        d = x.shape[1]
        if d <= _K_TILE_MAX:
            tk, d_pad = d, d            # full-dim K block: no (8,128) constraint
        else:
            tk = _K_TILE_MAX
            d_pad = _round_up(d, tk)
        ntiles = d_pad // tk

        x = x.astype(jnp.bfloat16)
        if (m_pad != B) or (d_pad != d):
            x = jnp.pad(x, ((0, m_pad - B), (0, d_pad - d)))
        if d_pad != d:
            w = jnp.pad(w, ((0, d_pad - d), (0, 0)))
        xs_p.append(x)
        ws_p.append(w)

        s, t = k_start, ntiles
        # Clamp the local K index outside this input's segment so the block
        # index does not change -> Pallas skips the (unused) re-fetch.
        specs_x.append(pl.BlockSpec(
            (tm, tk), lambda m, n_, k, s=s, t=t: (m, jnp.clip(k - s, 0, t - 1))))
        specs_w.append(pl.BlockSpec(
            (tk, tn), lambda m, n_, k, s=s, t=t: (jnp.clip(k - s, 0, t - 1), n_)))
        segments.append((s, t))
        k_start += ntiles
    total_k = k_start

    kernel = _make_block_kernel(n, segments, total_k)

    out = pl.pallas_call(
        kernel,
        out_shape=jax.ShapeDtypeStruct((m_pad, n_pad), out_dtype),
        grid_spec=pltpu.PrefetchScalarGridSpec(
            num_scalar_prefetch=0,
            grid=(m_pad // tm, n_pad // tn, total_k),
            in_specs=specs_x + specs_w + [
                pl.BlockSpec((1, tn), lambda m, n_, k: (0, n_)),
            ],
            out_specs=pl.BlockSpec((tm, tn), lambda m, n_, k: (m, n_)),
            scratch_shapes=[pltpu.VMEM((tm, tn), jnp.float32)],
        ),
        compiler_params=pltpu.CompilerParams(
            dimension_semantics=("parallel", "parallel", "arbitrary"),
        ),
    )(*xs_p, *ws_p, b_padded)

    if (m_pad != B) or (n_pad != outsize):
        out = out[:B, :outsize]
    return out


class PallasLinearBlock:
    """JAX/Pallas analogue of neuromancer Block with a Linear block_eval.

    forward(*inputs) keeps Block semantics (inputs concatenated along the last
    dim) but the concat is never materialized: each input multiplies the
    matching row-slice of W inside the tiled kernel.
    """

    def __init__(self, insize, outsize, key):
        self.insize = insize
        self.outsize = outsize
        self.n_pad = _round_up(outsize, 128)   # lane-dense output columns

        k_w, k_b = jax.random.split(key)
        bound = 1.0 / float(insize) ** 0.5
        w = jax.random.uniform(k_w, (insize, outsize), jnp.float32, -bound, bound)
        b = jax.random.uniform(k_b, (outsize,), jnp.float32, -bound, bound)

        self.w_f32 = w          # f32 masters kept only for reference checks
        self.b_f32 = b
        pad_n = self.n_pad - outsize
        # Kernel-ready params prepared ONCE: bf16 weights, padded columns,
        # 2-D f32 bias (no per-call reshape/cast).
        self.w = jnp.pad(w.astype(jnp.bfloat16), ((0, 0), (0, pad_n)))
        self.b = jnp.pad(b, (0, pad_n)).reshape(1, self.n_pad).astype(jnp.float32)

    def forward(self, *inputs):
        dims = [int(x.shape[-1]) for x in inputs]
        assert sum(dims) == self.insize, "concatenated width must equal insize"
        if len(inputs) == 1:
            ws = [self.w]
        else:
            # Split W by rows (static slices) instead of concatenating xs.
            offs = [0]
            for d in dims:
                offs.append(offs[-1] + d)
            ws = [self.w[offs[i]:offs[i + 1]] for i in range(len(inputs))]
        return block_eval_pallas(list(inputs), ws, self.b, self.outsize)

    def block_eval(self, x):
        return self.forward(x)

    __call__ = forward


if __name__ == "__main__":
    key = jax.random.PRNGKey(0)
    k1, k2, k3, kp1, kp2 = jax.random.split(key, 5)

    # --- Case 1: two-input forward (concat semantics), MXU-friendly sizes. ---
    batch, d1, d2, outsize = 128, 128, 64, 256
    insize = d1 + d2
    x1 = jax.random.normal(k1, (batch, d1), jnp.float32)
    x2 = jax.random.normal(k2, (batch, d2), jnp.float32)
    block = PallasLinearBlock(insize, outsize, kp1)

    y = block(x1, x2)
    jax.block_until_ready(y)
    assert y.shape == (batch, outsize)

    # Reference with the same bf16 rounding of x and W, f32 math.
    x_cat = jnp.concatenate([x1, x2], axis=-1).astype(jnp.bfloat16).astype(jnp.float32)
    w_ref = block.w[:, :outsize].astype(jnp.float32)
    y_ref = x_cat @ w_ref + block.b_f32
    assert jnp.allclose(y, y_ref, atol=1e-3, rtol=1e-3), \
        float(jnp.max(jnp.abs(y - y_ref)))

    # --- Case 2: single input, non-tile-aligned shapes (exercises padding). ---
    batch2, insize2, outsize2 = 50, 40, 100
    x3 = jax.random.normal(k3, (batch2, insize2), jnp.float32)
    block2 = PallasLinearBlock(insize2, outsize2, kp2)
    y2 = block2(x3)
    jax.block_until_ready(y2)
    assert y2.shape == (batch2, outsize2)
    x3r = x3.astype(jnp.bfloat16).astype(jnp.float32)
    y2_ref = x3r @ block2.w[:, :outsize2].astype(jnp.float32) + block2.b_f32
    assert jnp.allclose(y2, y2_ref, atol=1e-3, rtol=1e-3), \
        float(jnp.max(jnp.abs(y2 - y2_ref)))

    print("KERNEL_OK")
</pallas_src>

<mosaic_0001>
module attributes {stable_mosaic.version = 11 : i64} {
  func.func @kernel(%arg0: i32, %arg1: i32, %arg2: i32, %arg3: memref<128x128xbf16, #tpu.memory_space<vmem>>, %arg4: memref<128x64xbf16, #tpu.memory_space<vmem>>, %arg5: memref<128x256xbf16, #tpu.memory_space<vmem>>, %arg6: memref<64x256xbf16, #tpu.memory_space<vmem>>, %arg7: memref<1x256xf32, #tpu.memory_space<vmem>>, %arg8: memref<128x256xf32, #tpu.memory_space<vmem>>, %arg9: memref<128x256xf32, #tpu.memory_space<vmem>>) attributes {dimension_semantics = [#tpu.dimension_semantics<parallel>, #tpu.dimension_semantics<parallel>, #tpu.dimension_semantics<arbitrary>], iteration_bounds = array<i64: 1, 1, 2>, scalar_prefetch = 0 : i64, scratch_operands = 1 : i64, tpu.core_type = #tpu.core_type<tc>, window_params = [{transform_indices = @transform_0, window_bounds = array<i64: 128, 128>}, {transform_indices = @transform_1, window_bounds = array<i64: 128, 64>}, {transform_indices = @transform_2, window_bounds = array<i64: 128, 256>}, {transform_indices = @transform_3, window_bounds = array<i64: 64, 256>}, {transform_indices = @transform_4, window_bounds = array<i64: 1, 256>}, {transform_indices = @transform_5, window_bounds = array<i64: 128, 256>}]} {
    %c0_i32 = arith.constant 0 : i32
    %0 = arith.cmpi eq, %arg2, %c0_i32 : i32
    %1 = arith.extui %0 : i1 to i32
    %c0_i32_0 = arith.constant 0 : i32
    %2 = arith.cmpi ne, %1, %c0_i32_0 : i32
    scf.if %2 {
      %cst = arith.constant 0.000000e+00 : f32
      %16 = vector.broadcast %cst : f32 to vector<128x256xf32>
      %c0 = arith.constant 0 : index
      %c0_7 = arith.constant 0 : index
      %17 = vector.load %arg9[%c0, %c0_7] : memref<128x256xf32, #tpu.memory_space<vmem>>, vector<128x256xf32>
      tpu.vector_store %arg9[%c0, %c0_7], %16 {strides = array<i32>} : memref<128x256xf32, #tpu.memory_space<vmem>>, vector<128x256xf32>,
    } else {
    }
    %c0_i32_1 = arith.constant 0 : i32
    %3 = arith.cmpi sge, %arg2, %c0_i32_1 : i32
    %c1_i32 = arith.constant 1 : i32
    %4 = arith.cmpi slt, %arg2, %c1_i32 : i32
    %5 = arith.andi %3, %4 : i1
    %6 = arith.extui %5 : i1 to i32
    %c0_i32_2 = arith.constant 0 : i32
    %7 = arith.cmpi ne, %6, %c0_i32_2 : i32
    scf.if %7 {
      %c0 = arith.constant 0 : index
      %c0_7 = arith.constant 0 : index
      %16 = vector.load %arg9[%c0, %c0_7] : memref<128x256xf32, #tpu.memory_space<vmem>>, vector<128x256xf32>
      %c0_8 = arith.constant 0 : index
      %c0_9 = arith.constant 0 : index
      %17 = vector.load %arg3[%c0_8, %c0_9] : memref<128x128xbf16, #tpu.memory_space<vmem>>, vector<128x128xbf16>
      %c0_10 = arith.constant 0 : index
      %c0_11 = arith.constant 0 : index
      %18 = vector.load %arg5[%c0_10, %c0_11] : memref<128x256xbf16, #tpu.memory_space<vmem>>, vector<128x256xbf16>
      %cst = arith.constant dense<0.000000e+00> : vector<128x256xf32>
      %19 = tpu.matmul %17, %18, %cst {dimension_numbers = #tpu.dot_dimension_numbers<[1], [0], [0], [1], [0, 0, 1, 1], [], []>} : vector<128x128xbf16>, vector<128x256xbf16>, vector<128x256xf32> -> vector<128x256xf32>
      %20 = arith.addf %16, %19 : vector<128x256xf32>
      %c0_12 = arith.constant 0 : index
      %c0_13 = arith.constant 0 : index
      %21 = vector.load %arg9[%c0_12, %c0_13] : memref<128x256xf32, #tpu.memory_space<vmem>>, vector<128x256xf32>
      tpu.vector_store %arg9[%c0_12, %c0_13], %20 {strides = array<i32>} : memref<128x256xf32, #tpu.memory_space<vmem>>, vector<128x256xf32>,
    } else {
    }
    %c1_i32_3 = arith.constant 1 : i32
    %8 = arith.cmpi sge, %arg2, %c1_i32_3 : i32
    %c2_i32 = arith.constant 2 : i32
    %9 = arith.cmpi slt, %arg2, %c2_i32 : i32
    %10 = arith.andi %8, %9 : i1
    %11 = arith.extui %10 : i1 to i32
    %c0_i32_4 = arith.constant 0 : i32
    %12 = arith.cmpi ne, %11, %c0_i32_4 : i32
    scf.if %12 {
      %c0 = arith.constant 0 : index
      %c0_7 = arith.constant 0 : index
      %16 = vector.load %arg9[%c0, %c0_7] : memref<128x256xf32, #tpu.memory_space<vmem>>, vector<128x256xf32>
      %c0_8 = arith.constant 0 : index
      %c0_9 = arith.constant 0 : index
      %17 = vector.load %arg4[%c0_8, %c0_9] : memref<128x64xbf16, #tpu.memory_space<vmem>>, vector<128x64xbf16>
      %c0_10 = arith.constant 0 : index
      %c0_11 = arith.constant 0 : index
      %18 = vector.load %arg6[%c0_10, %c0_11] : memref<64x256xbf16, #tpu.memory_space<vmem>>, vector<64x256xbf16>
      %cst = arith.constant dense<0.000000e+00> : vector<128x256xf32>
      %19 = tpu.matmul %17, %18, %cst {dimension_numbers = #tpu.dot_dimension_numbers<[1], [0], [0], [1], [0, 0, 1, 1], [], []>} : vector<128x64xbf16>, vector<64x256xbf16>, vector<128x256xf32> -> vector<128x256xf32>
      %20 = arith.addf %16, %19 : vector<128x256xf32>
      %c0_12 = arith.constant 0 : index
      %c0_13 = arith.constant 0 : index
      %21 = vector.load %arg9[%c0_12, %c0_13] : memref<128x256xf32, #tpu.memory_space<vmem>>, vector<128x256xf32>
      tpu.vector_store %arg9[%c0_12, %c0_13], %20 {strides = array<i32>} : memref<128x256xf32, #tpu.memory_space<vmem>>, vector<128x256xf32>,
    } else {
    }
    %c1_i32_5 = arith.constant 1 : i32
    %13 = arith.cmpi eq, %arg2, %c1_i32_5 : i32
    %14 = arith.extui %13 : i1 to i32
    %c0_i32_6 = arith.constant 0 : i32
    %15 = arith.cmpi ne, %14, %c0_i32_6 : i32
    scf.if %15 {
      %c0 = arith.constant 0 : index
      %c0_7 = arith.constant 0 : index
      %16 = vector.load %arg9[%c0, %c0_7] : memref<128x256xf32, #tpu.memory_space<vmem>>, vector<128x256xf32>
      %c0_8 = arith.constant 0 : index
      %c0_9 = arith.constant 0 : index
      %17 = vector.load %arg7[%c0_8, %c0_9] : memref<1x256xf32, #tpu.memory_space<vmem>>, vector<1x256xf32>
      %18 = vector.broadcast %17 : vector<1x256xf32> to vector<128x256xf32>
      %19 = arith.addf %16, %18 : vector<128x256xf32>
      %c0_10 = arith.constant 0 : index
      %c0_11 = arith.constant 0 : index
      %20 = vector.load %arg8[%c0_10, %c0_11] : memref<128x256xf32, #tpu.memory_space<vmem>>, vector<128x256xf32>
      tpu.vector_store %arg8[%c0_10, %c0_11], %19 {strides = array<i32>} : memref<128x256xf32, #tpu.memory_space<vmem>>, vector<128x256xf32>,
    } else {
    }
    return
  }
  func.func @transform_0(%arg0: i32, %arg1: i32, %arg2: i32) -> (i32, i32) {
    %c0_i32 = arith.constant 0 : i32
    %0 = arith.subi %arg2, %c0_i32 : i32
    %c0_i32_0 = arith.constant 0 : i32
    %c0_i32_1 = arith.constant 0 : i32
    %1 = arith.maxsi %c0_i32_0, %0 : i32
    %2 = arith.minsi %c0_i32_1, %1 : i32
    %c0_i32_2 = arith.constant 0 : i32
    return %arg0, %2 : i32, i32
  }
  func.func @transform_1(%arg0: i32, %arg1: i32, %arg2: i32) -> (i32, i32) {
    %c1_i32 = arith.constant 1 : i32
    %0 = arith.subi %arg2, %c1_i32 : i32
    %c0_i32 = arith.constant 0 : i32
    %c0_i32_0 = arith.constant 0 : i32
    %1 = arith.maxsi %c0_i32, %0 : i32
    %2 = arith.minsi %c0_i32_0, %1 : i32
    %c0_i32_1 = arith.constant 0 : i32
    return %arg0, %2 : i32, i32
  }
  func.func @transform_2(%arg0: i32, %arg1: i32, %arg2: i32) -> (i32, i32) {
    %c0_i32 = arith.constant 0 : i32
    %0 = arith.subi %arg2, %c0_i32 : i32
    %c0_i32_0 = arith.constant 0 : i32
    %c0_i32_1 = arith.constant 0 : i32
    %1 = arith.maxsi %c0_i32_0, %0 : i32
    %2 = arith.minsi %c0_i32_1, %1 : i32
    %c0_i32_2 = arith.constant 0 : i32
    return %2, %arg1 : i32, i32
  }
  func.func @transform_3(%arg0: i32, %arg1: i32, %arg2: i32) -> (i32, i32) {
    %c1_i32 = arith.constant 1 : i32
    %0 = arith.subi %arg2, %c1_i32 : i32
    %c0_i32 = arith.constant 0 : i32
    %c0_i32_0 = arith.constant 0 : i32
    %1 = arith.maxsi %c0_i32, %0 : i32
    %2 = arith.minsi %c0_i32_0, %1 : i32
    %c0_i32_1 = arith.constant 0 : i32
    return %2, %arg1 : i32, i32
  }
  func.func @transform_4(%arg0: i32, %arg1: i32, %arg2: i32) -> (i32, i32) {
    %c0_i32 = arith.constant 0 : i32
    %c0_i32_0 = arith.constant 0 : i32
    return %c0_i32, %arg1 : i32, i32
  }
  func.func @transform_5(%arg0: i32, %arg1: i32, %arg2: i32) -> (i32, i32) {
    %c0_i32 = arith.constant 0 : i32
    return %arg0, %arg1 : i32, i32
  }
}

</mosaic_0001>

<bundles_post_ra>
// kernel: tpu_custom_call.1
= control target key start
LH: loop header
LB: loop body
LE: loop exit
PB: predicated region body
PF: predicated region fallthrough
CT: control target
= control target key end

     0   :  { %10 = vsyncpa [#allocation4], 0  ;;  %s2195_s0 = inlined_call_operand.vmem [shape: bf16[128,128], index: 0, kind: input, shape index: {}]   ;;  %s2196_s1 = inlined_call_operand.vmem [shape: bf16[128,64], index: 1, kind: input, shape index: {}]   ;;  %s2197_s2 = inlined_call_operand.hbm [shape: bf16[128,256], index: 2, kind: input, shape index: {}]   ;;  %s2198_s3 = inlined_call_operand.hbm [shape: bf16[64,256], index: 3, kind: input, shape index: {}]   ;;  %s2199_s4 = inlined_call_operand.vmem [shape: f32[1,256], index: 4, kind: input, shape index: {}]   ;;  %s2200_s5 = inlined_call_operand.hbm [shape: f32[128,256], index: 5, kind: output, shape index: {}]  }
   0x1   :  { %12 = vsyncpa [#allocation4 + $0x1], 0 }
   0x2   :  { %13 = vsyncpa [#allocation7], 0 }
   0x3   :  { %15 = vsyncpa [#allocation7 + $0x1], 0 }
   0x4   :  { %16 = vsyncpa [#allocation5], 0  ;;  %s2029_s18 = smov 0   ;;  %s2031_s19 = smov 0  }
   0x5   :  { %s2033_s20 = smov 0  }
   0x6 LB: > { %s1488_s21 = sadd.s32 4294967295, %s1989_s20   ;;  %s34_s22 = sadd.s32 1, %s1985_s19  ;;  %s1989_s20 = sphi %s2033_s20, %s22_s20   ;;  %s1985_s19 = sphi %s2031_s19, %s2203_s19   ;;  %s1981_s18 = sphi %s2029_s18, %s2202_s18  }
   0x7   : > { %p35_p0 = scmp.ge.s32.totalorder %s34_s22, 2  ;;  %p140_p1 = scmp.eq.s32.totalorder %s1989_s20, 0 }
   0x8   : > { %p2049_p2 = scmp.eq.s32.totalorder %s1488_s21, 0  ;;  %p1832_p3 = scmp.lt.s32.totalorder %s1989_s20, 2 }
   0x9   : > { %s2205_s22 = smov (%p35_p0, %s34_s22), 0  ;;  %s328_s26 = sshll.u32 %s2197_s2, 4  ;;  %s329_s26 = int_to_ptr.hbm [resolvable:$true] %s328_s26 }
   0xa   : > { %s1991_s27 = smov [#allocation3]   ;;  %p1826_p4 = pnand %p1832_p3, %p140_p1 }
   0xb   : > { %s330_s28 = sshll.u32 %s1991_s27, 4  ;;  %s1992_s29 = smov 128   ;;  %s331_s28 = int_to_ptr.vmem [resolvable:$true] %s330_s28 }
   0xc   : > { %s1993_s30 = smov 8   ;;  %p1555_p5 = scmp.ge.s32.totalorder %s1989_s20, 1 }
   0xd   : > { %1828 = dma.hbm_to_vmem [thread:$0]  (!%p1826_p4), %s329_s26, 2048, %s331_s28, [#allocation4], %s1992_s29, %s1992_s29, %s1993_s30  }
   0xe   : > { %p368_p6 = scmp.lt.s32.totalorder %s1989_s20, 3  ;;  %s358_s8 = sshll.u32 %s2198_s3, 4  ;;  %s359_s8 = int_to_ptr.hbm [resolvable:$true] %s358_s8 }
   0xf   : > { %s1994_s9 = smov [#allocation6]  }
  0x10   : > { %p369_p7 = pnand %p1555_p5, %p368_p6  ;;  %s360_s10 = sshll.u32 %s1994_s9, 4  ;;  %s361_s10 = int_to_ptr.vmem [resolvable:$true] %s360_s10 }
  0x11   : > { %1831 = dma.hbm_to_vmem [thread:$0]  (!%p1826_p4), %s359_s8, 1024, %s361_s10, [#allocation7], %s1992_s29, %s1992_s29, %s1993_s30  }
  0x12   : > { %372 = sbr.rel (%p369_p7) target bundleno = 570 (0x23a), region = 40 }
  0x17   : > { %1968 = dma.done.wait (%p2049_p2), [#allocation4], 2048  }
  0x18   : > { %1970 = vsyncadd (%p2049_p2), [#allocation4], 4294965248 }
  0x19   : > { %1972 = dma.done.wait (%p2049_p2), [#allocation7], 1024  }
  0x1a   : > { %1974 = vsyncadd (%p2049_p2), [#allocation7], 4294966272  ;;  %p1571_p8 = scmp.ne.s32.totalorder %s1981_s18, 0 }
  0x1c   : > { %505 = sbr.rel (%p1571_p8) target bundleno = 66 (0x42), region = 52 }
  0x21   : > { %v1995_v0 = vmov 0.0  }
  0x22   : > { %506 = vst [vmem:[#allocation2 + $0xb0] sm:$0xff] %v1995_v0 }
  0x23   : > { %507 = vst [vmem:[#allocation2] sm:$0xff] %v1995_v0 }
  0x24   : > { %508 = vst [vmem:[#allocation2 + $0xd8] sm:$0xff] %v1995_v0 }
  0x25   : > { %509 = vst [vmem:[#allocation2 + $0x18] sm:$0xff] %v1995_v0 }
  0x26   : > { %510 = vst [vmem:[#allocation2 + $0x50] sm:$0xff] %v1995_v0 }
  0x27   : > { %511 = vst [vmem:[#allocation2 + $0x68] sm:$0xff] %v1995_v0 }
  0x28   : > { %512 = vst [vmem:[#allocation2 + $0x30] sm:$0xff] %v1995_v0 }
  0x29   : > { %513 = vst [vmem:[#allocation2 + $0x48] sm:$0xff] %v1995_v0 }
  0x2a   : > { %514 = vst [vmem:[#allocation2 + $0x80] sm:$0xff] %v1995_v0 }
  0x2b   : > { %515 = vst [vmem:[#allocation2 + $0x88] sm:$0xff] %v1995_v0 }
  0x2c   : > { %516 = vst [vmem:[#allocation2 + $0xe8] sm:$0xff] %v1995_v0 }
  0x2d   : > { %517 = vst [vmem:[#allocation2 + $0xb8] sm:$0xff] %v1995_v0 }
  0x2e   : > { %518 = vst [vmem:[#allocation2 + $0x60] sm:$0xff] %v1995_v0 }
  0x2f   : > { %519 = vst [vmem:[#allocation2 + $0xf0] sm:$0xff] %v1995_v0 }
  0x30   : > { %520 = vst [vmem:[#allocation2 + $0x8] sm:$0xff] %v1995_v0 }
  0x31   : > { %521 = vst [vmem:[#allocation2 + $0x78] sm:$0xff] %v1995_v0 }
  0x32   : > { %522 = vst [vmem:[#allocation2 + $0x38] sm:$0xff] %v1995_v0 }
  0x33   : > { %523 = vst [vmem:[#allocation2 + $0x58] sm:$0xff] %v1995_v0 }
  0x34   : > { %524 = vst [vmem:[#allocation2 + $0x40] sm:$0xff] %v1995_v0 }
  0x35   : > { %525 = vst [vmem:[#allocation2 + $0xc8] sm:$0xff] %v1995_v0 }
  0x36   : > { %526 = vst [vmem:[#allocation2 + $0xe0] sm:$0xff] %v1995_v0 }
  0x37   : > { %527 = vst [vmem:[#allocation2 + $0x90] sm:$0xff] %v1995_v0 }
  0x38   : > { %528 = vst [vmem:[#allocation2 + $0x70] sm:$0xff] %v1995_v0 }
  0x39   : > { %529 = vst [vmem:[#allocation2 + $0xc0] sm:$0xff] %v1995_v0 }
  0x3a   : > { %530 = vst [vmem:[#allocation2 + $0xa8] sm:$0xff] %v1995_v0 }
  0x3b   : > { %531 = vst [vmem:[#allocation2 + $0xd0] sm:$0xff] %v1995_v0 }
  0x3c   : > { %532 = vst [vmem:[#allocation2 + $0x10] sm:$0xff] %v1995_v0 }
  0x3d   : > { %533 = vst [vmem:[#allocation2 + $0x28] sm:$0xff] %v1995_v0 }
  0x3e   : > { %534 = vst [vmem:[#allocation2 + $0xa0] sm:$0xff] %v1995_v0 }
  0x3f   : > { %535 = vst [vmem:[#allocation2 + $0xf8] sm:$0xff] %v1995_v0 }
  0x40   : > { %536 = vst [vmem:[#allocation2 + $0x20] sm:$0xff] %v1995_v0 }
  0x41   : > { %537 = vst [vmem:[#allocation2 + $0x98] sm:$0xff] %v1995_v0 }
  0x42 PF: > { %p538_p9 = scmp.ge.s32.totalorder %s1981_s18, 0  ;;  %p539_p10 = scmp.lt.s32.totalorder %s1981_s18, 1 }
  0x44   : > { %p540_p11 = pnand %p539_p10, %p538_p9 }
  0x46   : > { %543 = sbr.rel (%p540_p11) target bundleno = 301 (0x12d), region = 56 }
  0x4b   : > { %v1662_v1 = vld [vmem:[#allocation3 + $0x70] sm:$0xf]  ;;  %v1776_v2 = vld [vmem:[#allocation3 + $0x74] sm:$0xf0]  ;;  %v1775_v3 = vld [vmem:[#allocation3 + $0x74] sm:$0xf] }
  0x4c   : > { %v1663_v4 = vor.u32 %v1776_v2, %v1662_v1  ;;  %v1664_v5 = vld [vmem:[#allocation3 + $0x78] sm:$0xf0]  ;;  %v1654_v6 = vld [vmem:[#allocation3 + $0x60] sm:$0xf]  ;;  %v1774_v7 = vld [vmem:[#allocation3 + $0x64] sm:$0xf0] }
  0x4d   : > { %v1667_v8 = vor.u32 %v1775_v3, %v1664_v5  ;;  %v1773_v9 = vld [vmem:[#allocation3 + $0x64] sm:$0xf]  ;;  %v1656_v10 = vld [vmem:[#allocation3 + $0x68] sm:$0xf0]  ;;  %v1655_v11 = vor.u32 %v1774_v7, %v1654_v6  ;;  %v1646_v13 = vld [vmem:[#allocation3 + $0x50] sm:$0xf] }
  0x4e   : > { %736 = vmatpush.bf16.msra.mxu0 %v1663_v4  ;;  %1793 = vmatpush.bf16.msra.mxu2 %v1663_v4  ;;  %v1659_v12 = vor.u32 %v1773_v9, %v1656_v10  ;;  %v1772_v14 = vld [vmem:[#allocation3 + $0x54] sm:$0xf0]  ;;  %v1771_v15 = vld [vmem:[#allocation3 + $0x54] sm:$0xf]  ;;  %v1648_v16 = vld [vmem:[#allocation3 + $0x58] sm:$0xf0] }
  0x4f   : > { %785 = vmatpush.bf16.msra.mxu1 %v1667_v8  ;;  %1801 = vmatpush.bf16.msra.mxu3 %v1667_v8  ;;  %v1647_v17 = vor.u32 %v1772_v14, %v1646_v13  ;;  %v1651_v18 = vor.u32 %v1771_v15, %v1648_v16  ;;  %v1638_v19 = vld [vmem:[#allocation3 + $0x40] sm:$0xf]  ;;  %v1770_v20 = vld [vmem:[#allocation3 + $0x44] sm:$0xf0]  ;;  %v1769_v21 = vld [vmem:[#allocation3 + $0x44] sm:$0xf] }
  0x50   : > { %v1640_v22 = vld [vmem:[#allocation3 + $0x48] sm:$0xf0]  ;;  %v1639_v23 = vor.u32 %v1770_v20, %v1638_v19  ;;  %v1630_v25 = vld [vmem:[#allocation3 + $0x30] sm:$0xf]  ;;  %v1768_v26 = vld [vmem:[#allocation3 + $0x34] sm:$0xf0] }
  0x51   : > { %v1643_v24 = vor.u32 %v1769_v21, %v1640_v22  ;;  %v1767_v27 = vld [vmem:[#allocation3 + $0x34] sm:$0xf]  ;;  %v1632_v28 = vld [vmem:[#allocation3 + $0x38] sm:$0xf0]  ;;  %v1631_v29 = vor.u32 %v1768_v26, %v1630_v25  ;;  %v1622_v31 = vld [vmem:[#allocation3 + $0x20] sm:$0xf] }
  0x52   : > { %737 = vmatpush.bf16.msra.mxu0 %v1655_v11  ;;  %1794 = vmatpush.bf16.msra.mxu2 %v1655_v11  ;;  %v1635_v30 = vor.u32 %v1767_v27, %v1632_v28  ;;  %v1766_v32 = vld [vmem:[#allocation3 + $0x24] sm:$0xf0]  ;;  %v1765_v33 = vld [vmem:[#allocation3 + $0x24] sm:$0xf]  ;;  %v1624_v34 = vld [vmem:[#allocation3 + $0x28] sm:$0xf0] }
  0x53   : > { %786 = vmatpush.bf16.msra.mxu1 %v1659_v12  ;;  %1802 = vmatpush.bf16.msra.mxu3 %v1659_v12  ;;  %v1623_v35 = vor.u32 %v1766_v32, %v1622_v31  ;;  %v1627_v36 = vor.u32 %v1765_v33, %v1624_v34  ;;  %v1614_v37 = vld [vmem:[#allocation3 + $0x10] sm:$0xf]  ;;  %v1764_v38 = vld [vmem:[#allocation3 + $0x14] sm:$0xf0]  ;;  %v1763_v39 = vld [vmem:[#allocation3 + $0x14] sm:$0xf] }
  0x54   : > { %v1616_v40 = vld [vmem:[#allocation3 + $0x18] sm:$0xf0]  ;;  %v1615_v41 = vor.u32 %v1764_v38, %v1614_v37  ;;  %v1606_v43 = vld [vmem:[#allocation3] sm:$0xf]  ;;  %v1762_v44 = vld [vmem:[#allocation3 + $0x4] sm:$0xf0] }
  0x55   : > { %v1619_v42 = vor.u32 %v1763_v39, %v1616_v40  ;;  %v1761_v45 = vld [vmem:[#allocation3 + $0x4] sm:$0xf]  ;;  %v1608_v46 = vld [vmem:[#allocation3 + $0x8] sm:$0xf0]  ;;  %v1607_v47 = vor.u32 %v1762_v44, %v1606_v43  ;;  %v1755_v53 = vld [vmem:[%s2195_s0 + $0x10] sm:$0xff] }
  0x56   : > { %738 = vmatpush.bf16.msra.mxu0 %v1647_v17  ;;  %1795 = vmatpush.bf16.msra.mxu2 %v1647_v17  ;;  %v1611_v48 = vor.u32 %v1761_v45, %v1608_v46  ;;  %v1753_v49 = vld [vmem:[%s2195_s0] sm:$0xff]  ;;  %v1754_v51 = vld [vmem:[%s2195_s0 + $0x8] sm:$0xff]  ;;  %v1759_v54 = vld [vmem:[%s2195_s0 + $0x30] sm:$0xff] }
  0x57   : > { %787 = vmatpush.bf16.msra.mxu1 %v1651_v18  ;;  %1803 = vmatpush.bf16.msra.mxu3 %v1651_v18  ;;  %v1757_v50 = vld [vmem:[%s2195_s0 + $0x20] sm:$0xff]  ;;  %v1758_v52 = vld [vmem:[%s2195_s0 + $0x28] sm:$0xff]  ;;  %v1756_v55 = vld [vmem:[%s2195_s0 + $0x18] sm:$0xff] }
  0x58   : > { %v1760_v56 = vld [vmem:[%s2195_s0 + $0x38] sm:$0xff]  ;;  %v544_v57 = vld [vmem:[#allocation2 + $0xb0] sm:$0xff]  ;;  %v545_v58 = vld [vmem:[#allocation2] sm:$0xff] }
  0x59   : > { %v560_v63 = vld [vmem:[#allocation2 + $0x38] sm:$0xff]  ;;  %v562_v11 = vld [vmem:[#allocation2 + $0x40] sm:$0xff]  ;;  %v563_v12 = vld [vmem:[#allocation2 + $0xc8] sm:$0xff] }
  0x5a   : > { %739 = vmatpush.bf16.msra.mxu0 %v1639_v23  ;;  %1796 = vmatpush.bf16.msra.mxu2 %v1639_v23  ;;  %v561_v0 = vld [vmem:[#allocation2 + $0x58] sm:$0xff]  ;;  %v548_v14 = vld [vmem:[#allocation2 + $0x50] sm:$0xff]  ;;  %v549_v17 = vld [vmem:[#allocation2 + $0x68] sm:$0xff] }
  0x5b   : > { %788 = vmatpush.bf16.msra.mxu1 %v1643_v24  ;;  %1804 = vmatpush.bf16.msra.mxu3 %v1643_v24  ;;  %v546_v2 = vld [vmem:[#allocation2 + $0xd8] sm:$0xff]  ;;  %v564_v23 = vld [vmem:[#allocation2 + $0xe0] sm:$0xff]  ;;  %v565_v24 = vld [vmem:[#allocation2 + $0x90] sm:$0xff] }
  0x5c   : > { %v547_v5 = vld [vmem:[#allocation2 + $0x18] sm:$0xff]  ;;  %v550_v26 = vld [vmem:[#allocation2 + $0x30] sm:$0xff]  ;;  %v552_v38 = vld [vmem:[#allocation2 + $0x80] sm:$0xff] }
  0x5e   : > { %740 = vmatpush.bf16.msra.mxu0 %v1631_v29  ;;  %1797 = vmatpush.bf16.msra.mxu2 %v1631_v29  ;;  %v551_v29 = vld [vmem:[#allocation2 + $0x48] sm:$0xff] }
  0x5f   : > { %789 = vmatpush.bf16.msra.mxu1 %v1635_v30  ;;  %1805 = vmatpush.bf16.msra.mxu3 %v1635_v30 }
  0x62   : > { %741 = vmatpush.bf16.msra.mxu0 %v1623_v35  ;;  %1798 = vmatpush.bf16.msra.mxu2 %v1623_v35  ;;  %v566_v35 = vld [vmem:[#allocation2 + $0x70] sm:$0xff] }
  0x63   : > { %790 = vmatpush.bf16.msra.mxu1 %v1627_v36  ;;  %1806 = vmatpush.bf16.msra.mxu3 %v1627_v36  ;;  %v567_v36 = vld [vmem:[#allocation2 + $0xc0] sm:$0xff] }
  0x66   : > { %742 = vmatpush.bf16.msra.mxu0 %v1615_v41  ;;  %1799 = vmatpush.bf16.msra.mxu2 %v1615_v41  ;;  %v553_v41 = vld [vmem:[#allocation2 + $0x88] sm:$0xff] }
  0x67   : > { %791 = vmatpush.bf16.msra.mxu1 %v1619_v42  ;;  %1807 = vmatpush.bf16.msra.mxu3 %v1619_v42 }
  0x6a   : > { %743 = vmatpush.bf16.msra.mxu0 %v1607_v47  ;;  %1800 = vmatpush.bf16.msra.mxu2 %v1607_v47  ;;  %v568_v47 = vld [vmem:[#allocation2 + $0xa8] sm:$0xff] }
  0x6b   : > { %792 = vmatpush.bf16.msra.mxu1 %v1611_v48  ;;  %1808 = vmatpush.bf16.msra.mxu3 %v1611_v48  ;;  %v569_v48 = vld [vmem:[#allocation2 + $0xd0] sm:$0xff] }
  0x6d   : > { %744 = vmatmul.bf16.vlgmr.msra.gmra.mxu0 %v1753_v49  ;;  %764 = vmatmul.bf16.vlgmr.msra.gmra.mxu2 %v1757_v50 }
  0x6e   : > { %793 = vmatmul.bf16.vlgmr.msra.gmra.mxu1 %v1753_v49  ;;  %813 = vmatmul.bf16.vlgmr.msra.gmra.mxu3 %v1757_v50  ;;  %v554_v50 = vld [vmem:[#allocation2 + $0xe8] sm:$0xff] }
  0x7d   : > { %749 = vmatmul.bf16.gmra.mxu0 %v1754_v51  ;;  %769 = vmatmul.bf16.gmra.mxu2 %v1758_v52 }
  0x7e   : > { %798 = vmatmul.bf16.gmra.mxu1 %v1754_v51  ;;  %818 = vmatmul.bf16.gmra.mxu3 %v1758_v52 }
  0x8d   : > { %754 = vmatmul.bf16.gmra.mxu0 %v1755_v53  ;;  %774 = vmatmul.bf16.gmra.mxu2 %v1759_v54 }
  0x8e   : > { %803 = vmatmul.bf16.gmra.mxu1 %v1755_v53  ;;  %823 = vmatmul.bf16.gmra.mxu3 %v1759_v54  ;;  %v555_v53 = vld [vmem:[#allocation2 + $0xb8] sm:$0xff] }
  0x9d   : > { %759 = vmatmul.bf16.gmra.mxu0 %v1756_v55  ;;  %779 = vmatmul.bf16.gmra.mxu2 %v1760_v56 }
  0x9e   : > { %808 = vmatmul.bf16.gmra.mxu1 %v1756_v55  ;;  %828 = vmatmul.bf16.gmra.mxu3 %v1760_v56 }
  0xea   : > { %v745_v59 = vpop.f32.mrf.mxu0 }
  0xeb   : > { %v834_v60 = vadd.f32 %v745_v59, %v544_v57  ;;  %v794_v61 = vpop.f32.mrf.mxu1  ;;  %v570_v59 = vld [vmem:[#allocation2 + $0x10] sm:$0xff] }
  0xec   : > { %v835_v62 = vadd.f32 %v794_v61, %v545_v58 }
  0xed   : > { %866 = vst [vmem:[#allocation2 + $0xb0] sm:$0xff] %v834_v60  ;;  %v571_v60 = vld [vmem:[#allocation2 + $0x28] sm:$0xff] }
  0xee   : > { %867 = vst [vmem:[#allocation2] sm:$0xff] %v835_v62  ;;  %v556_v62 = vld [vmem:[#allocation2 + $0x60] sm:$0xff] }
  0xf0   : > { %v765_v1 = vpop.f32.mrf.mxu2 }
  0xf1   : > { %v850_v3 = vadd.f32 %v765_v1, %v560_v63  ;;  %v814_v4 = vpop.f32.mrf.mxu3  ;;  %v557_v1 = vld [vmem:[#allocation2 + $0xf0] sm:$0xff] }
  0xf2   : > { %v851_v6 = vadd.f32 %v814_v4, %v561_v0  ;;  %v747_v7 = vpop.f32.mrf.mxu0 }
  0xf3   : > { %882 = vst [vmem:[#allocation2 + $0x38] sm:$0xff] %v850_v3  ;;  %v836_v8 = vadd.f32 %v747_v7, %v546_v2  ;;  %v796_v9 = vpop.f32.mrf.mxu1  ;;  %v572_v7 = vld [vmem:[#allocation2 + $0xa0] sm:$0xff] }
  0xf4   : > { %883 = vst [vmem:[#allocation2 + $0x58] sm:$0xff] %v851_v6  ;;  %v837_v10 = vadd.f32 %v796_v9, %v547_v5 }
  0xf5   : > { %868 = vst [vmem:[#allocation2 + $0xd8] sm:$0xff] %v836_v8  ;;  %v573_v8 = vld [vmem:[#allocation2 + $0xf8] sm:$0xff] }
  0xf6   : > { %869 = vst [vmem:[#allocation2 + $0x18] sm:$0xff] %v837_v10  ;;  %v558_v10 = vld [vmem:[#allocation2 + $0x8] sm:$0xff] }
  0xf8   : > { %v767_v13 = vpop.f32.mrf.mxu2 }
  0xf9   : > { %v852_v15 = vadd.f32 %v767_v13, %v562_v11  ;;  %v816_v16 = vpop.f32.mrf.mxu3  ;;  %v559_v13 = vld [vmem:[#allocation2 + $0x78] sm:$0xff] }
  0xfa   : > { %v853_v18 = vadd.f32 %v816_v16, %v563_v12  ;;  %v750_v19 = vpop.f32.mrf.mxu0 }
  0xfb   : > { %884 = vst [vmem:[#allocation2 + $0x40] sm:$0xff] %v852_v15  ;;  %v838_v20 = vadd.f32 %v750_v19, %v548_v14  ;;  %v799_v21 = vpop.f32.mrf.mxu1  ;;  %v574_v19 = vld [vmem:[#allocation2 + $0x20] sm:$0xff] }
  0xfc   : > { %885 = vst [vmem:[#allocation2 + $0xc8] sm:$0xff] %v853_v18  ;;  %v839_v22 = vadd.f32 %v799_v21, %v549_v17 }
  0xfd   : > { %870 = vst [vmem:[#allocation2 + $0x50] sm:$0xff] %v838_v20  ;;  %v575_v20 = vld [vmem:[#allocation2 + $0x98] sm:$0xff] }
  0xfe   : > { %871 = vst [vmem:[#allocation2 + $0x68] sm:$0xff] %v839_v22 }
 0x100   : > { %v770_v25 = vpop.f32.mrf.mxu2 }
 0x101   : > { %v854_v27 = vadd.f32 %v770_v25, %v564_v23  ;;  %v819_v28 = vpop.f32.mrf.mxu3 }
 0x102   : > { %v855_v30 = vadd.f32 %v819_v28, %v565_v24  ;;  %v752_v31 = vpop.f32.mrf.mxu0 }
 0x103   : > { %886 = vst [vmem:[#allocation2 + $0xe0] sm:$0xff] %v854_v27  ;;  %v840_v32 = vadd.f32 %v752_v31, %v550_v26  ;;  %v801_v33 = vpop.f32.mrf.mxu1 }
 0x104   : > { %887 = vst [vmem:[#allocation2 + $0x90] sm:$0xff] %v855_v30  ;;  %v841_v34 = vadd.f32 %v801_v33, %v551_v29 }
 0x105   : > { %872 = vst [vmem:[#allocation2 + $0x30] sm:$0xff] %v840_v32 }
 0x106   : > { %873 = vst [vmem:[#allocation2 + $0x48] sm:$0xff] %v841_v34 }
 0x108   : > { %v772_v37 = vpop.f32.mrf.mxu2 }
 0x109   : > { %v856_v39 = vadd.f32 %v772_v37, %v566_v35  ;;  %v821_v40 = vpop.f32.mrf.mxu3 }
 0x10a   : > { %v857_v42 = vadd.f32 %v821_v40, %v567_v36  ;;  %v755_v43 = vpop.f32.mrf.mxu0 }
 0x10b   : > { %888 = vst [vmem:[#allocation2 + $0x70] sm:$0xff] %v856_v39  ;;  %v842_v44 = vadd.f32 %v755_v43, %v552_v38  ;;  %v804_v45 = vpop.f32.mrf.mxu1 }
 0x10c   : > { %889 = vst [vmem:[#allocation2 + $0xc0] sm:$0xff] %v857_v42  ;;  %v843_v46 = vadd.f32 %v804_v45, %v553_v41 }
 0x10d   : > { %874 = vst [vmem:[#allocation2 + $0x80] sm:$0xff] %v842_v44 }
 0x10e   : > { %875 = vst [vmem:[#allocation2 + $0x88] sm:$0xff] %v843_v46 }
 0x110   : > { %v775_v49 = vpop.f32.mrf.mxu2 }
 0x111   : > { %v858_v51 = vadd.f32 %v775_v49, %v568_v47  ;;  %v824_v52 = vpop.f32.mrf.mxu3 }
 0x112   : > { %v859_v54 = vadd.f32 %v824_v52, %v569_v48  ;;  %v757_v55 = vpop.f32.mrf.mxu0 }
 0x113   : > { %890 = vst [vmem:[#allocation2 + $0xa8] sm:$0xff] %v858_v51  ;;  %v844_v56 = vadd.f32 %v757_v55, %v554_v50  ;;  %v806_v57 = vpop.f32.mrf.mxu1 }
 0x114   : > { %891 = vst [vmem:[#allocation2 + $0xd0] sm:$0xff] %v859_v54  ;;  %v845_v58 = vadd.f32 %v806_v57, %v555_v53 }
 0x115   : > { %876 = vst [vmem:[#allocation2 + $0xe8] sm:$0xff] %v844_v56 }
 0x116   : > { %877 = vst [vmem:[#allocation2 + $0xb8] sm:$0xff] %v845_v58 }
 0x118   : > { %v777_v61 = vpop.f32.mrf.mxu2 }
 0x119   : > { %v860_v63 = vadd.f32 %v777_v61, %v570_v59  ;;  %v826_v0 = vpop.f32.mrf.mxu3 }
 0x11a   : > { %v861_v2 = vadd.f32 %v826_v0, %v571_v60  ;;  %v760_v3 = vpop.f32.mrf.mxu0 }
 0x11b   : > { %892 = vst [vmem:[#allocation2 + $0x10] sm:$0xff] %v860_v63  ;;  %v846_v4 = vadd.f32 %v760_v3, %v556_v62  ;;  %v809_v5 = vpop.f32.mrf.mxu1 }
 0x11c   : > { %893 = vst [vmem:[#allocation2 + $0x28] sm:$0xff] %v861_v2  ;;  %v847_v6 = vadd.f32 %v809_v5, %v557_v1 }
 0x11d   : > { %878 = vst [vmem:[#allocation2 + $0x60] sm:$0xff] %v846_v4 }
 0x11e   : > { %879 = vst [vmem:[#allocation2 + $0xf0] sm:$0xff] %v847_v6 }
 0x120   : > { %v780_v9 = vpop.f32.mrf.mxu2 }
 0x121   : > { %v862_v11 = vadd.f32 %v780_v9, %v572_v7  ;;  %v829_v12 = vpop.f32.mrf.mxu3 }
 0x122   : > { %v863_v14 = vadd.f32 %v829_v12, %v573_v8  ;;  %v762_v15 = vpop.f32.mrf.mxu0 }
 0x123   : > { %894 = vst [vmem:[#allocation2 + $0xa0] sm:$0xff] %v862_v11  ;;  %v848_v16 = vadd.f32 %v762_v15, %v558_v10  ;;  %v811_v17 = vpop.f32.mrf.mxu1 }
 0x124   : > { %895 = vst [vmem:[#allocation2 + $0xf8] sm:$0xff] %v863_v14  ;;  %v849_v18 = vadd.f32 %v811_v17, %v559_v13 }
 0x125   : > { %880 = vst [vmem:[#allocation2 + $0x8] sm:$0xff] %v848_v16 }
 0x126   : > { %881 = vst [vmem:[#allocation2 + $0x78] sm:$0xff] %v849_v18 }
 0x128   : > { %v782_v21 = vpop.f32.mrf.mxu2 }
 0x129   : > { %v864_v22 = vadd.f32 %v782_v21, %v574_v19  ;;  %v831_v23 = vpop.f32.mrf.mxu3 }
 0x12a   : > { %v865_v24 = vadd.f32 %v831_v23, %v575_v20 }
 0x12b   : > { %896 = vst [vmem:[#allocation2 + $0x20] sm:$0xff] %v864_v22 }
 0x12c   : > { %897 = vst [vmem:[#allocation2 + $0x98] sm:$0xff] %v865_v24 }
 0x12d PF: > { %p898_p12 = scmp.ge.s32.totalorder %s1981_s18, 1  ;;  %p899_p13 = scmp.lt.s32.totalorder %s1981_s18, 2 }
 0x12f   : > { %p900_p0 = pnand %p899_p13, %p898_p12 }
 0x131   : > { %903 = sbr.rel (%p900_p0) target bundleno = 520 (0x208), region = 60 }
 0x136   : > { %v1726_v25 = vld [vmem:[#allocation6 + $0x30] sm:$0xf]  ;;  %v1792_v26 = vld [vmem:[#allocation6 + $0x34] sm:$0xf0]  ;;  %v1791_v27 = vld [vmem:[#allocation6 + $0x34] sm:$0xf] }
 0x137   : > { %v1727_v28 = vor.u32 %v1792_v26, %v1726_v25  ;;  %v1728_v29 = vld [vmem:[#allocation6 + $0x38] sm:$0xf0]  ;;  %v1718_v30 = vld [vmem:[#allocation6 + $0x20] sm:$0xf]  ;;  %v1790_v31 = vld [vmem:[#allocation6 + $0x24] sm:$0xf0] }
 0x138   : > { %v1731_v32 = vor.u32 %v1791_v27, %v1728_v29  ;;  %v1789_v33 = vld [vmem:[#allocation6 + $0x24] sm:$0xf]  ;;  %v1720_v34 = vld [vmem:[#allocation6 + $0x28] sm:$0xf0]  ;;  %v1719_v35 = vor.u32 %v1790_v31, %v1718_v30  ;;  %v1710_v37 = vld [vmem:[#allocation6 + $0x10] sm:$0xf] }
 0x139   : > { %1069 = vmatpush.bf16.msra.mxu0 %v1727_v28  ;;  %1809 = vmatpush.bf16.msra.mxu2 %v1727_v28  ;;  %v1723_v36 = vor.u32 %v1789_v33, %v1720_v34  ;;  %v1788_v38 = vld [vmem:[#allocation6 + $0x14] sm:$0xf0]  ;;  %v1787_v39 = vld [vmem:[#allocation6 + $0x14] sm:$0xf]  ;;  %v1712_v40 = vld [vmem:[#allocation6 + $0x18] sm:$0xf0] }
 0x13a   : > { %1118 = vmatpush.bf16.msra.mxu1 %v1731_v32  ;;  %1813 = vmatpush.bf16.msra.mxu3 %v1731_v32  ;;  %v1711_v41 = vor.u32 %v1788_v38, %v1710_v37  ;;  %v1715_v42 = vor.u32 %v1787_v39, %v1712_v40  ;;  %v1702_v43 = vld [vmem:[#allocation6] sm:$0xf]  ;;  %v1786_v44 = vld [vmem:[#allocation6 + $0x4] sm:$0xf0]  ;;  %v1785_v45 = vld [vmem:[#allocation6 + $0x4] sm:$0xf] }
 0x13b   : > { %v1704_v46 = vld [vmem:[#allocation6 + $0x8] sm:$0xf0]  ;;  %v1703_v47 = vor.u32 %v1786_v44, %v1702_v43  ;;  %v1777_v49 = vld [vmem:[%s2196_s1] sm:$0xff]  ;;  %vm1040_vm0 = vcmask 523264   ;;  %v1779_v53 = vld [vmem:[%s2196_s1 + $0x10] sm:$0xff] }
 0x13c   : > { %v1707_v48 = vor.u32 %v1785_v45, %v1704_v46  ;;  %v1781_v50 = vld [vmem:[%s2196_s1 + $0x20] sm:$0xff]  ;;  %v1778_v51 = vld [vmem:[%s2196_s1 + $0x8] sm:$0xff]  ;;  %v1783_v54 = vld [vmem:[%s2196_s1 + $0x30] sm:$0xff] }
 0x13d   : > { %1070 = vmatpush.bf16.msra.mxu0 %v1719_v35  ;;  %1810 = vmatpush.bf16.msra.mxu2 %v1719_v35  ;;  %v1782_v52 = vld [vmem:[%s2196_s1 + $0x28] sm:$0xff]  ;;  %v1780_v55 = vld [vmem:[%s2196_s1 + $0x18] sm:$0xff]  ;;  %v904_v57 = vld [vmem:[#allocation2 + $0xb0] sm:$0xff] }
 0x13e   : > { %1119 = vmatpush.bf16.msra.mxu1 %v1723_v36  ;;  %1814 = vmatpush.bf16.msra.mxu3 %v1723_v36  ;;  %v1784_v56 = vld [vmem:[%s2196_s1 + $0x38] sm:$0xff]  ;;  %v905_v58 = vld [vmem:[#allocation2] sm:$0xff]  ;;  %v923_v12 = vld [vmem:[#allocation2 + $0xc8] sm:$0xff] }
 0x13f   : > { %v920_v63 = vld [vmem:[#allocation2 + $0x38] sm:$0xff]  ;;  %v922_v11 = vld [vmem:[#allocation2 + $0x40] sm:$0xff]  ;;  %v908_v14 = vld [vmem:[#allocation2 + $0x50] sm:$0xff] }
 0x140   : > { %v921_v0 = vld [vmem:[#allocation2 + $0x58] sm:$0xff]  ;;  %v909_v17 = vld [vmem:[#allocation2 + $0x68] sm:$0xff]  ;;  %v924_v23 = vld [vmem:[#allocation2 + $0xe0] sm:$0xff] }
 0x141   : > { %1071 = vmatpush.bf16.msra.mxu0 %v1711_v41  ;;  %1811 = vmatpush.bf16.msra.mxu2 %v1711_v41  ;;  %v906_v2 = vld [vmem:[#allocation2 + $0xd8] sm:$0xff]  ;;  %v925_v24 = vld [vmem:[#allocation2 + $0x90] sm:$0xff]  ;;  %v911_v29 = vld [vmem:[#allocation2 + $0x48] sm:$0xff] }
 0x142   : > { %1120 = vmatpush.bf16.msra.mxu1 %v1715_v42  ;;  %1815 = vmatpush.bf16.msra.mxu3 %v1715_v42  ;;  %v907_v5 = vld [vmem:[#allocation2 + $0x18] sm:$0xff]  ;;  %v910_v26 = vld [vmem:[#allocation2 + $0x30] sm:$0xff]  ;;  %v927_v36 = vld [vmem:[#allocation2 + $0xc0] sm:$0xff] }
 0x143   : > { %v926_v35 = vld [vmem:[#allocation2 + $0x70] sm:$0xff]  ;;  %v912_v38 = vld [vmem:[#allocation2 + $0x80] sm:$0xff]  ;;  %v913_v41 = vld [vmem:[#allocation2 + $0x88] sm:$0xff] }
 0x145   : > { %1072 = vmatpush.bf16.msra.mxu0 %v1703_v47  ;;  %1812 = vmatpush.bf16.msra.mxu2 %v1703_v47  ;;  %v928_v47 = vld [vmem:[#allocation2 + $0xa8] sm:$0xff] }
 0x146   : > { %1121 = vmatpush.bf16.msra.mxu1 %v1707_v48  ;;  %1816 = vmatpush.bf16.msra.mxu3 %v1707_v48  ;;  %v929_v48 = vld [vmem:[#allocation2 + $0xd0] sm:$0xff] }
 0x148   : > { %1732 = vmatmul.msk.bf16.vlgmr.msra.gmra.mxu0 %vm1040_vm0, %v1777_v49  ;;  %1736 = vmatmul.msk.bf16.vlgmr.msra.gmra.mxu2 %vm1040_vm0, %v1781_v50 }
 0x149   : > { %1740 = vmatmul.msk.bf16.vlgmr.msra.gmra.mxu1 %vm1040_vm0, %v1777_v49  ;;  %1744 = vmatmul.msk.bf16.vlgmr.msra.gmra.mxu3 %vm1040_vm0, %v1781_v50  ;;  %v914_v50 = vld [vmem:[#allocation2 + $0xe8] sm:$0xff] }
 0x158   : > { %1733 = vmatmul.msk.bf16.gmra.mxu0 %vm1040_vm0, %v1778_v51  ;;  %1737 = vmatmul.msk.bf16.gmra.mxu2 %vm1040_vm0, %v1782_v52 }
 0x159   : > { %1741 = vmatmul.msk.bf16.gmra.mxu1 %vm1040_vm0, %v1778_v51  ;;  %1745 = vmatmul.msk.bf16.gmra.mxu3 %vm1040_vm0, %v1782_v52 }
 0x168   : > { %1734 = vmatmul.msk.bf16.gmra.mxu0 %vm1040_vm0, %v1779_v53  ;;  %1738 = vmatmul.msk.bf16.gmra.mxu2 %vm1040_vm0, %v1783_v54 }
 0x169   : > { %1742 = vmatmul.msk.bf16.gmra.mxu1 %vm1040_vm0, %v1779_v53  ;;  %1746 = vmatmul.msk.bf16.gmra.mxu3 %vm1040_vm0, %v1783_v54  ;;  %v915_v53 = vld [vmem:[#allocation2 + $0xb8] sm:$0xff] }
 0x178   : > { %1735 = vmatmul.msk.bf16.gmra.mxu0 %vm1040_vm0, %v1780_v55  ;;  %1739 = vmatmul.msk.bf16.gmra.mxu2 %vm1040_vm0, %v1784_v56 }
 0x179   : > { %1743 = vmatmul.msk.bf16.gmra.mxu1 %vm1040_vm0, %v1780_v55  ;;  %1747 = vmatmul.msk.bf16.gmra.mxu3 %vm1040_vm0, %v1784_v56 }
 0x1c5   : > { %v1074_v59 = vpop.f32.mrf.mxu0 }
 0x1c6   : > { %v1163_v60 = vadd.f32 %v1074_v59, %v904_v57  ;;  %v1123_v61 = vpop.f32.mrf.mxu1  ;;  %v930_v59 = vld [vmem:[#allocation2 + $0x10] sm:$0xff] }
 0x1c7   : > { %v1164_v62 = vadd.f32 %v1123_v61, %v905_v58 }
 0x1c8   : > { %1195 = vst [vmem:[#allocation2 + $0xb0] sm:$0xff] %v1163_v60  ;;  %v931_v60 = vld [vmem:[#allocation2 + $0x28] sm:$0xff] }
 0x1c9   : > { %1196 = vst [vmem:[#allocation2] sm:$0xff] %v1164_v62  ;;  %v916_v62 = vld [vmem:[#allocation2 + $0x60] sm:$0xff] }
 0x1cb   : > { %v1094_v1 = vpop.f32.mrf.mxu2 }
 0x1cc   : > { %v1179_v3 = vadd.f32 %v1094_v1, %v920_v63  ;;  %v1143_v4 = vpop.f32.mrf.mxu3  ;;  %v917_v1 = vld [vmem:[#allocation2 + $0xf0] sm:$0xff] }
 0x1cd   : > { %v1180_v6 = vadd.f32 %v1143_v4, %v921_v0  ;;  %v1076_v7 = vpop.f32.mrf.mxu0 }
 0x1ce   : > { %1211 = vst [vmem:[#allocation2 + $0x38] sm:$0xff] %v1179_v3  ;;  %v1165_v8 = vadd.f32 %v1076_v7, %v906_v2  ;;  %v1125_v9 = vpop.f32.mrf.mxu1  ;;  %v932_v7 = vld [vmem:[#allocation2 + $0xa0] sm:$0xff] }
 0x1cf   : > { %1212 = vst [vmem:[#allocation2 + $0x58] sm:$0xff] %v1180_v6  ;;  %v1166_v10 = vadd.f32 %v1125_v9, %v907_v5 }
 0x1d0   : > { %1197 = vst [vmem:[#allocation2 + $0xd8] sm:$0xff] %v1165_v8  ;;  %v933_v8 = vld [vmem:[#allocation2 + $0xf8] sm:$0xff] }
 0x1d1   : > { %1198 = vst [vmem:[#allocation2 + $0x18] sm:$0xff] %v1166_v10  ;;  %v918_v10 = vld [vmem:[#allocation2 + $0x8] sm:$0xff] }
 0x1d3   : > { %v1096_v13 = vpop.f32.mrf.mxu2 }
 0x1d4   : > { %v1181_v15 = vadd.f32 %v1096_v13, %v922_v11  ;;  %v1145_v16 = vpop.f32.mrf.mxu3  ;;  %v919_v13 = vld [vmem:[#allocation2 + $0x78] sm:$0xff] }
 0x1d5   : > { %v1182_v18 = vadd.f32 %v1145_v16, %v923_v12  ;;  %v1079_v19 = vpop.f32.mrf.mxu0 }
 0x1d6   : > { %1213 = vst [vmem:[#allocation2 + $0x40] sm:$0xff] %v1181_v15  ;;  %v1167_v20 = vadd.f32 %v1079_v19, %v908_v14  ;;  %v1128_v21 = vpop.f32.mrf.mxu1  ;;  %v934_v19 = vld [vmem:[#allocation2 + $0x20] sm:$0xff] }
 0x1d7   : > { %1214 = vst [vmem:[#allocation2 + $0xc8] sm:$0xff] %v1182_v18  ;;  %v1168_v22 = vadd.f32 %v1128_v21, %v909_v17 }
 0x1d8   : > { %1199 = vst [vmem:[#allocation2 + $0x50] sm:$0xff] %v1167_v20  ;;  %v935_v20 = vld [vmem:[#allocation2 + $0x98] sm:$0xff] }
 0x1d9   : > { %1200 = vst [vmem:[#allocation2 + $0x68] sm:$0xff] %v1168_v22 }
 0x1db   : > { %v1099_v25 = vpop.f32.mrf.mxu2 }
 0x1dc   : > { %v1183_v27 = vadd.f32 %v1099_v25, %v924_v23  ;;  %v1148_v28 = vpop.f32.mrf.mxu3 }
 0x1dd   : > { %v1184_v30 = vadd.f32 %v1148_v28, %v925_v24  ;;  %v1081_v31 = vpop.f32.mrf.mxu0 }
 0x1de   : > { %1215 = vst [vmem:[#allocation2 + $0xe0] sm:$0xff] %v1183_v27  ;;  %v1169_v32 = vadd.f32 %v1081_v31, %v910_v26  ;;  %v1130_v33 = vpop.f32.mrf.mxu1 }
 0x1df   : > { %1216 = vst [vmem:[#allocation2 + $0x90] sm:$0xff] %v1184_v30  ;;  %v1170_v34 = vadd.f32 %v1130_v33, %v911_v29 }
 0x1e0   : > { %1201 = vst [vmem:[#allocation2 + $0x30] sm:$0xff] %v1169_v32 }
 0x1e1   : > { %1202 = vst [vmem:[#allocation2 + $0x48] sm:$0xff] %v1170_v34 }
 0x1e3   : > { %v1101_v37 = vpop.f32.mrf.mxu2 }
 0x1e4   : > { %v1185_v39 = vadd.f32 %v1101_v37, %v926_v35  ;;  %v1150_v40 = vpop.f32.mrf.mxu3 }
 0x1e5   : > { %v1186_v42 = vadd.f32 %v1150_v40, %v927_v36  ;;  %v1084_v43 = vpop.f32.mrf.mxu0 }
 0x1e6   : > { %1217 = vst [vmem:[#allocation2 + $0x70] sm:$0xff] %v1185_v39  ;;  %v1171_v44 = vadd.f32 %v1084_v43, %v912_v38  ;;  %v1133_v45 = vpop.f32.mrf.mxu1 }
 0x1e7   : > { %1218 = vst [vmem:[#allocation2 + $0xc0] sm:$0xff] %v1186_v42  ;;  %v1172_v46 = vadd.f32 %v1133_v45, %v913_v41 }
 0x1e8   : > { %1203 = vst [vmem:[#allocation2 + $0x80] sm:$0xff] %v1171_v44 }
 0x1e9   : > { %1204 = vst [vmem:[#allocation2 + $0x88] sm:$0xff] %v1172_v46 }
 0x1eb   : > { %v1104_v49 = vpop.f32.mrf.mxu2 }
 0x1ec   : > { %v1187_v51 = vadd.f32 %v1104_v49, %v928_v47  ;;  %v1153_v52 = vpop.f32.mrf.mxu3 }
 0x1ed   : > { %v1188_v54 = vadd.f32 %v1153_v52, %v929_v48  ;;  %v1086_v55 = vpop.f32.mrf.mxu0 }
 0x1ee   : > { %1219 = vst [vmem:[#allocation2 + $0xa8] sm:$0xff] %v1187_v51  ;;  %v1173_v56 = vadd.f32 %v1086_v55, %v914_v50  ;;  %v1135_v57 = vpop.f32.mrf.mxu1 }
 0x1ef   : > { %1220 = vst [vmem:[#allocation2 + $0xd0] sm:$0xff] %v1188_v54  ;;  %v1174_v58 = vadd.f32 %v1135_v57, %v915_v53 }
 0x1f0   : > { %1205 = vst [vmem:[#allocation2 + $0xe8] sm:$0xff] %v1173_v56 }
 0x1f1   : > { %1206 = vst [vmem:[#allocation2 + $0xb8] sm:$0xff] %v1174_v58 }
 0x1f3   : > { %v1106_v61 = vpop.f32.mrf.mxu2 }
 0x1f4   : > { %v1189_v63 = vadd.f32 %v1106_v61, %v930_v59  ;;  %v1155_v0 = vpop.f32.mrf.mxu3 }
 0x1f5   : > { %v1190_v2 = vadd.f32 %v1155_v0, %v931_v60  ;;  %v1089_v3 = vpop.f32.mrf.mxu0 }
 0x1f6   : > { %1221 = vst [vmem:[#allocation2 + $0x10] sm:$0xff] %v1189_v63  ;;  %v1175_v4 = vadd.f32 %v1089_v3, %v916_v62  ;;  %v1138_v5 = vpop.f32.mrf.mxu1 }
 0x1f7   : > { %1222 = vst [vmem:[#allocation2 + $0x28] sm:$0xff] %v1190_v2  ;;  %v1176_v6 = vadd.f32 %v1138_v5, %v917_v1 }
 0x1f8   : > { %1207 = vst [vmem:[#allocation2 + $0x60] sm:$0xff] %v1175_v4 }
 0x1f9   : > { %1208 = vst [vmem:[#allocation2 + $0xf0] sm:$0xff] %v1176_v6 }
 0x1fb   : > { %v1109_v9 = vpop.f32.mrf.mxu2 }
 0x1fc   : > { %v1191_v11 = vadd.f32 %v1109_v9, %v932_v7  ;;  %v1158_v12 = vpop.f32.mrf.mxu3 }
 0x1fd   : > { %v1192_v14 = vadd.f32 %v1158_v12, %v933_v8  ;;  %v1091_v15 = vpop.f32.mrf.mxu0 }
 0x1fe   : > { %1223 = vst [vmem:[#allocation2 + $0xa0] sm:$0xff] %v1191_v11  ;;  %v1177_v16 = vadd.f32 %v1091_v15, %v918_v10  ;;  %v1140_v17 = vpop.f32.mrf.mxu1 }
 0x1ff   : > { %1224 = vst [vmem:[#allocation2 + $0xf8] sm:$0xff] %v1192_v14  ;;  %v1178_v18 = vadd.f32 %v1140_v17, %v919_v13 }
 0x200   : > { %1209 = vst [vmem:[#allocation2 + $0x8] sm:$0xff] %v1177_v16 }
 0x201   : > { %1210 = vst [vmem:[#allocation2 + $0x78] sm:$0xff] %v1178_v18 }
 0x203   : > { %v1111_v21 = vpop.f32.mrf.mxu2 }
 0x204   : > { %v1193_v22 = vadd.f32 %v1111_v21, %v934_v19  ;;  %v1160_v23 = vpop.f32.mrf.mxu3 }
 0x205   : > { %v1194_v24 = vadd.f32 %v1160_v23, %v935_v20 }
 0x206   : > { %1225 = vst [vmem:[#allocation2 + $0x20] sm:$0xff] %v1193_v22 }
 0x207   : > { %1226 = vst [vmem:[#allocation2 + $0x98] sm:$0xff] %v1194_v24 }
 0x208 PF: > { %p1748_p1 = scmp.ne.s32.totalorder %s1981_s18, 1 }
 0x20a   : > { %1230 = sbr.rel (%p1748_p1) target bundleno = 564 (0x234), region = 64 }
 0x20f   : > { %v1231_v25 = vld [vmem:[#allocation2 + $0xb0] sm:$0xff]  ;;  %v1263_v26 = vld [vmem:[%s2199_s4] sm:$0x3]  ;;  %v1233_v30 = vld [vmem:[#allocation2 + $0xd8] sm:$0xff] }
 0x210   : > { %v1232_v27 = vld [vmem:[#allocation2] sm:$0xff]  ;;  %v2145_v28 = vperm.slane %v1263_v26, 0  ;;  %v2147_v29 = vperm.slane %v1263_v26, 1  ;;  %v1234_v31 = vld [vmem:[#allocation2 + $0x18] sm:$0xff]  ;;  %v1235_v32 = vld [vmem:[#allocation2 + $0x50] sm:$0xff] }
 0x211   : > { %v1236_v36 = vld [vmem:[#allocation2 + $0x68] sm:$0xff]  ;;  %v1237_v38 = vld [vmem:[#allocation2 + $0x30] sm:$0xff]  ;;  %v1239_v42 = vld [vmem:[#allocation2 + $0x80] sm:$0xff] }
 0x212   : > { %v1269_v33 = vadd.f32 %v2145_v28, %v1231_v25  ;;  %v1270_v34 = vadd.f32 %v2147_v29, %v1232_v27  ;;  %v1271_v35 = vadd.f32 %v2145_v28, %v1233_v30  ;;  %v1272_v37 = vadd.f32 %v2147_v29, %v1234_v31  ;;  %v1238_v40 = vld [vmem:[#allocation2 + $0x48] sm:$0xff]  ;;  %v1242_v48 = vld [vmem:[#allocation2 + $0xb8] sm:$0xff]  ;;  %v1243_v50 = vld [vmem:[#allocation2 + $0x60] sm:$0xff] }
 0x213   : > { %v1273_v39 = vadd.f32 %v2145_v28, %v1235_v32  ;;  %v1274_v41 = vadd.f32 %v2147_v29, %v1236_v36  ;;  %v1275_v43 = vadd.f32 %v2145_v28, %v1237_v38  ;;  %v1240_v44 = vld [vmem:[#allocation2 + $0x88] sm:$0xff]  ;;  %v1276_v45 = vadd.f32 %v2147_v29, %v1238_v40  ;;  %v1244_v52 = vld [vmem:[#allocation2 + $0xf0] sm:$0xff]  ;;  %v1246_v56 = vld [vmem:[#allocation2 + $0x78] sm:$0xff] }
 0x214   : > { %1301 = vst [vmem:[#allocation8] sm:$0xff] %v1269_v33  ;;  %v1241_v46 = vld [vmem:[#allocation2 + $0xe8] sm:$0xff]  ;;  %v1277_v47 = vadd.f32 %v2145_v28, %v1239_v42  ;;  %v1278_v49 = vadd.f32 %v2147_v29, %v1240_v44  ;;  %v1280_v53 = vadd.f32 %v2147_v29, %v1242_v48  ;;  %v1281_v55 = vadd.f32 %v2145_v28, %v1243_v50  ;;  %v1247_v58 = vld [vmem:[#allocation2 + $0x38] sm:$0xff]  ;;  %v1249_v62 = vld [vmem:[#allocation2 + $0x40] sm:$0xff] }
 0x215   : > { %1302 = vst [vmem:[#allocation8 + $0x8] sm:$0xff] %v1270_v34  ;;  %v1279_v51 = vadd.f32 %v2145_v28, %v1241_v46  ;;  %v1245_v54 = vld [vmem:[#allocation2 + $0x8] sm:$0xff]  ;;  %v1282_v57 = vadd.f32 %v2147_v29, %v1244_v52  ;;  %v1248_v60 = vld [vmem:[#allocation2 + $0x58] sm:$0xff]  ;;  %v1284_v61 = vadd.f32 %v2147_v29, %v1246_v56  ;;  %v1285_v63 = vadd.f32 %v2145_v28, %v1247_v58  ;;  %v1251_v2 = vld [vmem:[#allocation2 + $0xe0] sm:$0xff] }
 0x216   : > { %1303 = vst [vmem:[#allocation8 + $0x10] sm:$0xff] %v1271_v35  ;;  %v1283_v59 = vadd.f32 %v2145_v28, %v1245_v54  ;;  %v1250_v0 = vld [vmem:[#allocation2 + $0xc8] sm:$0xff]  ;;  %v1286_v1 = vadd.f32 %v2147_v29, %v1248_v60  ;;  %v1287_v3 = vadd.f32 %v2145_v28, %v1249_v62  ;;  %v1252_v4 = vld [vmem:[#allocation2 + $0x90] sm:$0xff]  ;;  %v1289_v7 = vadd.f32 %v2145_v28, %v1251_v2  ;;  %v1254_v8 = vld [vmem:[#allocation2 + $0xc0] sm:$0xff] }
 0x217   : > { %1304 = vst [vmem:[#allocation8 + $0x18] sm:$0xff] %v1272_v37  ;;  %v1288_v5 = vadd.f32 %v2147_v29, %v1250_v0  ;;  %v1253_v6 = vld [vmem:[#allocation2 + $0x70] sm:$0xff]  ;;  %v1290_v9 = vadd.f32 %v2147_v29, %v1252_v4  ;;  %v1255_v10 = vld [vmem:[#allocation2 + $0xa8] sm:$0xff]  ;;  %v1292_v13 = vadd.f32 %v2147_v29, %v1254_v8  ;;  %v1259_v18 = vld [vmem:[#allocation2 + $0xa0] sm:$0xff] }
 0x218   : > { %1305 = vst [vmem:[#allocation8 + $0x20] sm:$0xff] %v1273_v39  ;;  %v1291_v11 = vadd.f32 %v2145_v28, %v1253_v6  ;;  %v1256_v12 = vld [vmem:[#allocation2 + $0xd0] sm:$0xff]  ;;  %v1293_v15 = vadd.f32 %v2145_v28, %v1255_v10  ;;  %v1258_v16 = vld [vmem:[#allocation2 + $0x28] sm:$0xff]  ;;  %v1260_v20 = vld [vmem:[#allocation2 + $0xf8] sm:$0xff]  ;;  %v1297_v23 = vadd.f32 %v2145_v28, %v1259_v18 }
 0x219   : > { %1306 = vst [vmem:[#allocation8 + $0x28] sm:$0xff] %v1274_v41  ;;  %v1257_v14 = vld [vmem:[#allocation2 + $0x10] sm:$0xff]  ;;  %v1294_v17 = vadd.f32 %v2147_v29, %v1256_v12  ;;  %v1296_v21 = vadd.f32 %v2147_v29, %v1258_v16  ;;  %v1261_v22 = vld [vmem:[#allocation2 + $0x20] sm:$0xff]  ;;  %v1262_v24 = vld [vmem:[#allocation2 + $0x98] sm:$0xff]  ;;  %v1298_v25 = vadd.f32 %v2147_v29, %v1260_v20 }
 0x21a   : > { %1307 = vst [vmem:[#allocation8 + $0x30] sm:$0xff] %v1275_v43  ;;  %v1295_v19 = vadd.f32 %v2145_v28, %v1257_v14  ;;  %v1299_v26 = vadd.f32 %v2145_v28, %v1261_v22  ;;  %v1300_v27 = vadd.f32 %v2147_v29, %v1262_v24 }
 0x21b   : > { %1308 = vst [vmem:[#allocation8 + $0x38] sm:$0xff] %v1276_v45 }
 0x21c   : > { %1309 = vst [vmem:[#allocation8 + $0x40] sm:$0xff] %v1277_v47 }
 0x21d   : > { %1310 = vst [vmem:[#allocation8 + $0x48] sm:$0xff] %v1278_v49 }
 0x21e   : > { %1311 = vst [vmem:[#allocation8 + $0x50] sm:$0xff] %v1279_v51 }
 0x21f   : > { %1312 = vst [vmem:[#allocation8 + $0x58] sm:$0xff] %v1280_v53 }
 0x220   : > { %1313 = vst [vmem:[#allocation8 + $0x60] sm:$0xff] %v1281_v55 }
 0x221   : > { %1314 = vst [vmem:[#allocation8 + $0x68] sm:$0xff] %v1282_v57 }
 0x222   : > { %1315 = vst [vmem:[#allocation8 + $0x70] sm:$0xff] %v1283_v59 }
 0x223   : > { %1316 = vst [vmem:[#allocation8 + $0x78] sm:$0xff] %v1284_v61 }
 0x224   : > { %1317 = vst [vmem:[#allocation8 + $0x80] sm:$0xff] %v1285_v63 }
 0x225   : > { %1318 = vst [vmem:[#allocation8 + $0x88] sm:$0xff] %v1286_v1 }
 0x226   : > { %1319 = vst [vmem:[#allocation8 + $0x90] sm:$0xff] %v1287_v3 }
 0x227   : > { %1320 = vst [vmem:[#allocation8 + $0x98] sm:$0xff] %v1288_v5 }
 0x228   : > { %1321 = vst [vmem:[#allocation8 + $0xa0] sm:$0xff] %v1289_v7 }
 0x229   : > { %1322 = vst [vmem:[#allocation8 + $0xa8] sm:$0xff] %v1290_v9 }
 0x22a   : > { %1323 = vst [vmem:[#allocation8 + $0xb0] sm:$0xff] %v1291_v11 }
 0x22b   : > { %1324 = vst [vmem:[#allocation8 + $0xb8] sm:$0xff] %v1292_v13 }
 0x22c   : > { %1325 = vst [vmem:[#allocation8 + $0xc0] sm:$0xff] %v1293_v15 }
 0x22d   : > { %1326 = vst [vmem:[#allocation8 + $0xc8] sm:$0xff] %v1294_v17 }
 0x22e   : > { %1327 = vst [vmem:[#allocation8 + $0xd0] sm:$0xff] %v1295_v19 }
 0x22f   : > { %1328 = vst [vmem:[#allocation8 + $0xd8] sm:$0xff] %v1296_v21 }
 0x230   : > { %1329 = vst [vmem:[#allocation8 + $0xe0] sm:$0xff] %v1297_v23 }
 0x231   : > { %1330 = vst [vmem:[#allocation8 + $0xe8] sm:$0xff] %v1298_v25 }
 0x232   : > { %1331 = vst [vmem:[#allocation8 + $0xf0] sm:$0xff] %v1299_v26 }
 0x233   : > { %1332 = vst [vmem:[#allocation8 + $0xf8] sm:$0xff] %v1300_v27 }
 0x234 PF: > { %p1833_p2 = scmp.eq.s32.totalorder %s1488_s21, 1  ;;  %s1346_s6 = sshll.u32 %s2200_s5, 4  ;;  %s1347_s6 = int_to_ptr.hbm [resolvable:$true] %s1346_s6 }
 0x235   : > { %s1996_s7 = smov [#allocation8]   ;;  %s1997_s9 = smov 256  }
 0x236   : > { %s1344_s8 = sshll.u32 %s1996_s7, 4  ;;  %s1998_s10 = smov 16   ;;  %s1345_s8 = int_to_ptr.vmem [resolvable:$true] %s1344_s8 }
 0x237   : > { %1822 = dma.vmem_to_hbm [thread:$0]  (%p1833_p2), %s1345_s8, 4096, %s1347_s6, [#allocation5], %s1997_s9, %s1997_s9, %s1998_s10  }
 0x238   : > { %1976 = dma.done.wait (%p1833_p2), [#allocation5], 4096  }
 0x239   : > { %1978 = vsyncadd (%p1833_p2), [#allocation5], 4294963200 }
 0x23a PF: > { %s22_s20 = sadd.s32 1, %s1989_s20   ;;  %s2202_s18 = smov %s1985_s19 }
 0x23b   : > { %p19_p3 = scmp.ge.s32.totalorder %s22_s20, 4   ;;  %s2203_s19 = smov %s2205_s22 }
 0x23d   :  { %21 = sbr.rel (!%p19_p3) target bundleno = 6 (0x6), region = 116 }
 0x242   :  { %1363 = vsyncpa [#allocation4], 1 }
 0x243   :  { %1365 = vsyncpa [#allocation4 + $0x1], 1 }
 0x244   :  { %1366 = vsyncpa [#allocation7], 1 }
 0x245   :  { %1368 = vsyncpa [#allocation7 + $0x1], 1 }
 0x246   :  { %1369 = vsyncpa [#allocation5], 1 }
 0x247   :  { %1371 = vsyncpa [#allocation5 + $0x1], 1 }

</bundles_post_ra>
